<compile_context>
chip_gen: v6e
topology: v6e:2x2x1
jax: 0.10.0
libtpu: 0.0.40
codegen_flags: <defaults>
</compile_context>

<pallas_src>
import functools

import jax
import jax.numpy as jnp
from jax.experimental import pallas as pl
from jax.experimental.pallas import tpu as pltpu

LANE = 128
MIB = 1024 * 1024


def _round_up(n: int, m: int) -> int:
    return ((n + m - 1) // m) * m


def _cdiv(a: int, b: int) -> int:
    return (a + b - 1) // b


def _tpu_generation() -> int:
    """Best-effort TPU generation from device_kind ('TPU v5 lite', 'TPU7x', ...)."""
    try:
        kind = jax.devices()[0].device_kind.lower()
    except Exception:
        return 0
    for g in (7, 6, 5, 4, 3):
        if (f"v{g}" in kind) or (f"tpu{g}" in kind) or (f" {g}x" in kind):
            return g
    return 0


def _vmem_capacity_bytes(gen: int) -> int:
    try:
        cap = int(getattr(pltpu.get_tpu_info(), "vmem_capacity_bytes"))
        if cap > 0:
            return cap
    except Exception:
        pass
    # Fallback: v5e/v6e have 128 MiB physical VMEM; v7x (and unknown) -> 64 MiB.
    return 128 * MIB if gen in (5, 6) else 64 * MIB


def _choose_block_batch(B, x_dim, y_dim, *, x_itemsize, w_resident_bytes,
                        chain_k_bytes_per_row, tile_budget_bytes, row_align):
    # Per-row VMEM of the streamed tiles: x tile (double-buffered, matmul dtype)
    # + y tile (double-buffered, f32) + the chain path's (TB, k) intermediate(s).
    bytes_per_row = (2 * x_itemsize * x_dim + 2 * 4 * y_dim
                     + chain_k_bytes_per_row)
    avail = max(tile_budget_bytes - w_resident_bytes, row_align * bytes_per_row)
    tb = (avail // bytes_per_row) // row_align * row_align
    tb = int(max(row_align, min(tb, 1024)))
    bp0 = _round_up(B, row_align)
    # Guarantee >= 2 batch tiles when the batch is big enough so the
    # ("parallel",) grid axis can be split across v7x's two TensorCores.
    if bp0 >= 2 * row_align:
        tb = min(tb, _round_up(_cdiv(bp0, 2), row_align))
    return min(tb, bp0)


def _folded_loss_kernel(x_ref, w_ref, y_ref, out_ref):
    # pred = x_tile @ (W1 @ W2); operands already in the MXU dtype (wrapper cast).
    pred = jnp.dot(x_ref[...], w_ref[...], preferred_element_type=jnp.float32)
    diff = pred - y_ref[...]                       # f32
    tile_sum = jnp.sum(diff * diff)                # scalar per tile, f32
    # Lane-dense (unmasked) store: broadcast the scalar across 128 lanes; the
    # wrapper reads lane 0 of each tile.
    out_ref[...] = jnp.full(out_ref.shape, tile_sum, jnp.float32)


def _chain_loss_kernel(x_ref, w1_ref, w2_ref, y_ref, out_ref, *, compute_dtype):
    # Two-matmul chain for the regime where folding would multiply MXU work.
    h = jnp.dot(x_ref[...], w1_ref[...], preferred_element_type=jnp.float32)
    pred = jnp.dot(h.astype(compute_dtype), w2_ref[...],
                   preferred_element_type=jnp.float32)
    diff = pred - y_ref[...]
    tile_sum = jnp.sum(diff * diff)
    out_ref[...] = jnp.full(out_ref.shape, tile_sum, jnp.float32)


def quadratic_model_loss(x, y, w1, w2, *, matmul_dtype=jnp.float32,
                         block_batch=None, fold=None,
                         single_buffer_weights=True):
    x = jnp.asarray(x, jnp.float32)
    y = jnp.asarray(y, jnp.float32)
    w1 = jnp.asarray(w1, jnp.float32)
    w2 = jnp.asarray(w2, jnp.float32)

    B, x_dim = x.shape
    k = w1.shape[1]
    y_dim = w2.shape[1]
    assert w1.shape == (x_dim, k)
    assert w2.shape == (k, y_dim)
    assert y.shape == (B, y_dim)

    matmul_dtype = jnp.dtype(matmul_dtype)
    x_itemsize = matmul_dtype.itemsize
    row_align = 16 if x_itemsize == 2 else 8       # bf16 sublane packing

    gen = _tpu_generation()
    phys_vmem = _vmem_capacity_bytes(gen)
    # ~96 MiB scoped on 128 MiB chips (v5e/v6e), ~48 MiB on v7x (64 MiB).
    vmem_limit = min(phys_vmem * 3 // 4, 96 * MIB)
    tile_budget = vmem_limit - 4 * MIB             # headroom for compiler scratch

    # MXU tile width used by the fold-vs-chain pass-count comparison.
    mxu_w = 256 if (gen >= 6 and x_itemsize == 2) else 128

    wbuf = 1 if single_buffer_weights else 2
    folded_w_bytes = wbuf * x_itemsize * x_dim * y_dim
    chain_w_bytes = wbuf * x_itemsize * (x_dim * k + k * y_dim)

    if fold is None:
        passes_fold = _cdiv(x_dim, mxu_w) * _cdiv(y_dim, mxu_w)
        passes_chain = _cdiv(k, mxu_w) * (_cdiv(x_dim, mxu_w) + _cdiv(y_dim, mxu_w))
        fold = (passes_fold <= passes_chain
                and folded_w_bytes + MIB <= tile_budget)
    # TODO(synk): if even the chain weights exceed the VMEM budget, stream them
    # K-tiled over an extra reduction grid axis instead of keeping them resident.

    # Pre-cast MXU operands in the wrapper (halves x HBM traffic for bf16 and
    # removes per-tile in-kernel casts); y stays f32 so diff/loss stay f32.
    x_c = x.astype(matmul_dtype) if x.dtype != matmul_dtype else x

    w_resident = folded_w_bytes if fold else chain_w_bytes
    chain_k_row = 0 if fold else (4 * k + (x_itemsize * k
                                           if matmul_dtype != jnp.float32 else 0))

    tb = block_batch if block_batch is not None else _choose_block_batch(
        B, x_dim, y_dim, x_itemsize=x_itemsize, w_resident_bytes=w_resident,
        chain_k_bytes_per_row=chain_k_row, tile_budget_bytes=tile_budget,
        row_align=row_align)
    tb = max(row_align, _round_up(int(tb), row_align))
    bp = _round_up(B, tb)
    num_tiles = bp // tb

    if bp != B:
        # Zero padding contributes exactly 0 to the squared-error sum
        # (0 @ W - 0 == 0); the mean below divides by the true B.
        x_c = jnp.pad(x_c, ((0, bp - B), (0, 0)))
        y = jnp.pad(y, ((0, bp - B), (0, 0)))

    x_spec = pl.BlockSpec((tb, x_dim), lambda i: (i, 0))
    y_spec = pl.BlockSpec((tb, y_dim), lambda i: (i, 0))
    out_spec = pl.BlockSpec((1, 1, LANE), lambda i: (i, 0, 0))

    if fold:
        w = jnp.dot(w1, w2, preferred_element_type=jnp.float32).astype(matmul_dtype)
        kernel = _folded_loss_kernel
        weight_arrays = (w,)
        weight_shapes = ((x_dim, y_dim),)
        operands = (x_c, w, y)
        matmul_flops = 2 * bp * x_dim * y_dim
    else:
        w1c = w1.astype(matmul_dtype)
        w2c = w2.astype(matmul_dtype)
        kernel = functools.partial(_chain_loss_kernel, compute_dtype=matmul_dtype)
        weight_arrays = (w1c, w2c)
        weight_shapes = ((x_dim, k), (k, y_dim))
        operands = (x_c, w1c, w2c, y)
        matmul_flops = 2 * bp * k * (x_dim + y_dim)

    weight_bytes = sum(int(a.size) * a.dtype.itemsize for a in weight_arrays)
    cost = pl.CostEstimate(
        flops=int(matmul_flops + 3 * bp * y_dim),
        transcendentals=0,
        bytes_accessed=int(int(x_c.size) * x_c.dtype.itemsize
                           + 4 * bp * y_dim + weight_bytes
                           + 4 * num_tiles * LANE),
    )

    def _weight_spec(shape, use_buffered):
        idx_map = lambda i, _rank=len(shape): (0,) * _rank
        if use_buffered:
            # Weights never change across grid steps -> single buffer (halves
            # their resident VMEM footprint vs the default double-buffering).
            return pl.BlockSpec(shape, idx_map, pipeline_mode=pl.Buffered(1))
        return pl.BlockSpec(shape, idx_map)

    def _build(use_buffered_weights):
        in_specs = ([x_spec]
                    + [_weight_spec(s, use_buffered_weights) for s in weight_shapes]
                    + [y_spec])
        return pl.pallas_call(
            kernel,
            out_shape=jax.ShapeDtypeStruct((num_tiles, 1, LANE), jnp.float32),
            grid_spec=pltpu.PrefetchScalarGridSpec(
                num_scalar_prefetch=0,
                grid=(num_tiles,),
                in_specs=in_specs,
                out_specs=out_spec,
            ),
            compiler_params=pltpu.CompilerParams(
                dimension_semantics=("parallel",),   # batch tiles are independent
                vmem_limit_bytes=int(vmem_limit),
            ),
            cost_estimate=cost,
        )

    if single_buffer_weights:
        try:
            partial_sums = _build(True)(*operands)
            jax.block_until_ready(partial_sums)
        except Exception:
            # pipeline_mode=pl.Buffered(1) unsupported on this jax/libtpu combo:
            # fall back to default double-buffered weight blocks (same result).
            partial_sums = _build(False)(*operands)
    else:
        partial_sums = _build(False)(*operands)

    # Tiny cross-tile reduction (lane 0 of each tile) + mean by the TRUE batch.
    return jnp.sum(partial_sums[:, 0, 0]) / jnp.float32(B)


if __name__ == "__main__":
    # Module-default feature sizes (x_dim=100, k=1, y_dim=100), small batch.
    B, x_dim, k, y_dim = 8, 100, 1, 100

    key = jax.random.PRNGKey(0)
    kx, ky, kw1, kw2 = jax.random.split(key, 4)
    x = jax.random.normal(kx, (B, x_dim), dtype=jnp.float32)
    y = jax.random.normal(ky, (B, y_dim), dtype=jnp.float32)
    W1 = jax.random.normal(kw1, (x_dim, k), dtype=jnp.float32)
    W2 = jax.random.normal(kw2, (k, y_dim), dtype=jnp.float32)

    # Pure-JAX reference with the module's exact formula.
    ref = jnp.mean(jnp.sum(jnp.square(x @ W1 @ W2 - y), axis=1))

    # Default path: small k -> folded weights, f32 MXU operands. (Folding
    # changes f32 association vs the chain; tolerance is intentionally modest.)
    loss = jax.block_until_ready(quadratic_model_loss(x, y, W1, W2))
    assert jnp.allclose(loss, ref, rtol=1e-2, atol=1e-2), (loss, ref)

    # Two-matmul chain path (what large x_dim/y_dim with small k would use).
    loss_chain = jax.block_until_ready(
        quadratic_model_loss(x, y, W1, W2, fold=False))
    assert jnp.allclose(loss_chain, ref, rtol=1e-2, atol=1e-2), (loss_chain, ref)

    # Ragged batch (B not a multiple of the tile): padded rows must contribute
    # 0 and the mean must divide by the true B.
    B2 = 20
    kx2, ky2 = jax.random.split(jax.random.PRNGKey(1))
    x2 = jax.random.normal(kx2, (B2, x_dim), dtype=jnp.float32)
    y2 = jax.random.normal(ky2, (B2, y_dim), dtype=jnp.float32)
    ref2 = jnp.mean(jnp.sum(jnp.square(x2 @ W1 @ W2 - y2), axis=1))
    loss2 = jax.block_until_ready(
        quadratic_model_loss(x2, y2, W1, W2, block_batch=8))
    assert jnp.allclose(loss2, ref2, rtol=1e-2, atol=1e-2), (loss2, ref2)

    # bf16 MXU operands (pre-cast in the wrapper) with f32 accumulation / f32
    # squared error; looser tolerance for bf16 operand rounding.
    loss_bf16 = jax.block_until_ready(
        quadratic_model_loss(x, y, W1, W2, matmul_dtype=jnp.bfloat16))
    assert jnp.allclose(loss_bf16, ref, rtol=5e-2, atol=5e-2), (loss_bf16, ref)

    print("KERNEL_OK")
</pallas_src>

<mosaic_0001>
module attributes {stable_mosaic.version = 11 : i64} {
  func.func @_folded_loss_kernel(%arg0: i32, %arg1: memref<8x100xf32, #tpu.memory_space<vmem>>, %arg2: memref<100x100xf32, #tpu.memory_space<vmem>>, %arg3: memref<8x100xf32, #tpu.memory_space<vmem>>, %arg4: memref<1x1x128xf32, #tpu.memory_space<vmem>>) attributes {dimension_semantics = [#tpu.dimension_semantics<parallel>], iteration_bounds = array<i64: 1>, scalar_prefetch = 0 : i64, scratch_operands = 0 : i64, tpu.core_type = #tpu.core_type<tc>, window_params = [{transform_indices = @transform_0, window_bounds = array<i64: 8, 100>}, {pipeline_mode = #tpu.pipeline_mode<synchronous>, transform_indices = @transform_1, window_bounds = array<i64: 100, 100>}, {transform_indices = @transform_2, window_bounds = array<i64: 8, 100>}, {transform_indices = @transform_3, window_bounds = array<i64: 1, 1, 128>}]} {
    %c0 = arith.constant 0 : index
    %c0_0 = arith.constant 0 : index
    %0 = vector.load %arg1[%c0, %c0_0] : memref<8x100xf32, #tpu.memory_space<vmem>>, vector<8x100xf32>
    %c0_1 = arith.constant 0 : index
    %c0_2 = arith.constant 0 : index
    %1 = vector.load %arg2[%c0_1, %c0_2] : memref<100x100xf32, #tpu.memory_space<vmem>>, vector<100x100xf32>
    %cst = arith.constant dense<0.000000e+00> : vector<8x100xf32>
    %2 = tpu.matmul %0, %1, %cst {dimension_numbers = #tpu.dot_dimension_numbers<[1], [0], [0], [1], [0, 0, 1, 1], [], []>} : vector<8x100xf32>, vector<100x100xf32>, vector<8x100xf32> -> vector<8x100xf32>
    %c0_3 = arith.constant 0 : index
    %c0_4 = arith.constant 0 : index
    %3 = vector.load %arg3[%c0_3, %c0_4] : memref<8x100xf32, #tpu.memory_space<vmem>>, vector<8x100xf32>
    %4 = arith.subf %2, %3 : vector<8x100xf32>
    %5 = arith.mulf %4, %4 : vector<8x100xf32>
    %6 = vector.shape_cast %5 : vector<8x100xf32> to vector<1x8x100xf32>
    %cst_5 = arith.constant dense<0.000000e+00> : vector<1xf32>
    %7 = vector.multi_reduction <add>, %6, %cst_5 [1, 2] : vector<1x8x100xf32> to vector<1xf32>
    %8 = vector.shape_cast %7 : vector<1xf32> to vector<1x1x1xf32>
    %9 = vector.extract %8[0, 0, 0] : f32 from vector<1x1x1xf32>
    %10 = vector.broadcast %9 : f32 to vector<1x1x128xf32>
    %c0_6 = arith.constant 0 : index
    %c0_7 = arith.constant 0 : index
    %c0_8 = arith.constant 0 : index
    %11 = vector.load %arg4[%c0_6, %c0_7, %c0_8] : memref<1x1x128xf32, #tpu.memory_space<vmem>>, vector<1x1x128xf32>
    tpu.vector_store %arg4[%c0_6, %c0_7, %c0_8], %10 {strides = array<i32>} : memref<1x1x128xf32, #tpu.memory_space<vmem>>, vector<1x1x128xf32>,
    return
  }
  func.func @transform_0(%arg0: i32) -> (i32, i32) {
    %c0_i32 = arith.constant 0 : i32
    %c0_i32_0 = arith.constant 0 : i32
    return %arg0, %c0_i32 : i32, i32
  }
  func.func @transform_1(%arg0: i32) -> (i32, i32) {
    %c0_i32 = arith.constant 0 : i32
    %c0_i32_0 = arith.constant 0 : i32
    %c0_i32_1 = arith.constant 0 : i32
    return %c0_i32, %c0_i32_0 : i32, i32
  }
  func.func @transform_2(%arg0: i32) -> (i32, i32) {
    %c0_i32 = arith.constant 0 : i32
    %c0_i32_0 = arith.constant 0 : i32
    return %arg0, %c0_i32 : i32, i32
  }
  func.func @transform_3(%arg0: i32) -> (i32, i32, i32) {
    %c0_i32 = arith.constant 0 : i32
    %c0_i32_0 = arith.constant 0 : i32
    %c0_i32_1 = arith.constant 0 : i32
    return %arg0, %c0_i32, %c0_i32_0 : i32, i32, i32
  }
}

module attributes {stable_mosaic.version = 11 : i64} {
  func.func @_folded_loss_kernel(%arg0: i32, %arg1: memref<8x100xf32, #tpu.memory_space<vmem>>, %arg2: memref<100x100xf32, #tpu.memory_space<vmem>>, %arg3: memref<8x100xf32, #tpu.memory_space<vmem>>, %arg4: memref<1x1x128xf32, #tpu.memory_space<vmem>>) attributes {dimension_semantics = [#tpu.dimension_semantics<parallel>], iteration_bounds = array<i64: 1>, scalar_prefetch = 0 : i64, scratch_operands = 0 : i64, tpu.core_type = #tpu.core_type<tc>, window_params = [{transform_indices = @transform_0, window_bounds = array<i64: 8, 100>}, {pipeline_mode = #tpu.pipeline_mode<synchronous>, transform_indices = @transform_1, window_bounds = array<i64: 100, 100>}, {transform_indices = @transform_2, window_bounds = array<i64: 8, 100>}, {transform_indices = @transform_3, window_bounds = array<i64: 1, 1, 128>}]} {
    %c0 = arith.constant 0 : index
    %c0_0 = arith.constant 0 : index
    %0 = vector.load %arg1[%c0, %c0_0] : memref<8x100xf32, #tpu.memory_space<vmem>>, vector<8x100xf32>
    %c0_1 = arith.constant 0 : index
    %c0_2 = arith.constant 0 : index
    %1 = vector.load %arg2[%c0_1, %c0_2] : memref<100x100xf32, #tpu.memory_space<vmem>>, vector<100x100xf32>
    %cst = arith.constant dense<0.000000e+00> : vector<8x100xf32>
    %2 = tpu.matmul %0, %1, %cst {dimension_numbers = #tpu.dot_dimension_numbers<[1], [0], [0], [1], [0, 0, 1, 1], [], []>} : vector<8x100xf32>, vector<100x100xf32>, vector<8x100xf32> -> vector<8x100xf32>
    %c0_3 = arith.constant 0 : index
    %c0_4 = arith.constant 0 : index
    %3 = vector.load %arg3[%c0_3, %c0_4] : memref<8x100xf32, #tpu.memory_space<vmem>>, vector<8x100xf32>
    %4 = arith.subf %2, %3 : vector<8x100xf32>
    %5 = arith.mulf %4, %4 : vector<8x100xf32>
    %6 = vector.shape_cast %5 : vector<8x100xf32> to vector<1x8x100xf32>
    %cst_5 = arith.constant dense<0.000000e+00> : vector<1xf32>
    %7 = vector.multi_reduction <add>, %6, %cst_5 [1, 2] : vector<1x8x100xf32> to vector<1xf32>
    %8 = vector.shape_cast %7 : vector<1xf32> to vector<1x1x1xf32>
    %9 = vector.extract %8[0, 0, 0] : f32 from vector<1x1x1xf32>
    %10 = vector.broadcast %9 : f32 to vector<1x1x128xf32>
    %c0_6 = arith.constant 0 : index
    %c0_7 = arith.constant 0 : index
    %c0_8 = arith.constant 0 : index
    %11 = vector.load %arg4[%c0_6, %c0_7, %c0_8] : memref<1x1x128xf32, #tpu.memory_space<vmem>>, vector<1x1x128xf32>
    tpu.vector_store %arg4[%c0_6, %c0_7, %c0_8], %10 {strides = array<i32>} : memref<1x1x128xf32, #tpu.memory_space<vmem>>, vector<1x1x128xf32>,
    return
  }
  func.func @transform_0(%arg0: i32) -> (i32, i32) {
    %c0_i32 = arith.constant 0 : i32
    %c0_i32_0 = arith.constant 0 : i32
    return %arg0, %c0_i32 : i32, i32
  }
  func.func @transform_1(%arg0: i32) -> (i32, i32) {
    %c0_i32 = arith.constant 0 : i32
    %c0_i32_0 = arith.constant 0 : i32
    %c0_i32_1 = arith.constant 0 : i32
    return %c0_i32, %c0_i32_0 : i32, i32
  }
  func.func @transform_2(%arg0: i32) -> (i32, i32) {
    %c0_i32 = arith.constant 0 : i32
    %c0_i32_0 = arith.constant 0 : i32
    return %arg0, %c0_i32 : i32, i32
  }
  func.func @transform_3(%arg0: i32) -> (i32, i32, i32) {
    %c0_i32 = arith.constant 0 : i32
    %c0_i32_0 = arith.constant 0 : i32
    %c0_i32_1 = arith.constant 0 : i32
    return %arg0, %c0_i32, %c0_i32_0 : i32, i32, i32
  }
}

</mosaic_0001>

<bundles_post_ra>
// kernel: tpu_custom_call.1
= control target key start
LH: loop header
LB: loop body
LE: loop exit
PB: predicated region body
PF: predicated region fallthrough
CT: control target
= control target key end

     0   :  { %8 = vsyncpa [#allocation3], 0  ;;  %s356_s0 = inlined_call_operand.hbm [shape: f32[8,100], index: 0, kind: input, shape index: {}]   ;;  %s357_s1 = inlined_call_operand.hbm [shape: f32[100,100], index: 1, kind: input, shape index: {}]   ;;  %s358_s2 = inlined_call_operand.hbm [shape: f32[8,100], index: 2, kind: input, shape index: {}]   ;;  %s359_s3 = inlined_call_operand.hbm [shape: f32[1,1,128], index: 3, kind: output, shape index: {}]  }
   0x1   :  { %9 = vsyncpa [#allocation6], 0 }
   0x2   :  { %10 = vsyncpa [#allocation4], 0  ;;  %s316_s12 = smov [#allocation5]  }
   0x3   :  { %s26_s13 = sshll.u32 %s316_s12, 4  ;;  %s27_s13 = int_to_ptr.vmem [resolvable:$true] %s26_s13 }
   0x4   :  { %s238_s14 = scalar_lea.vmem %s27_s13, 1664  ;;  %p243_p1 = scmp.lt.s32.totalorder %s27_s13, %s27_s13 }
   0x5   :  { %p239_p0 = scmp.ne.s32.totalorder %s27_s13, %s238_s14  ;;  %p244_p2 = scmp.lt.s32.totalorder %s238_s14, %s238_s14 }
   0x7   :  { %p245_p3 = por %p244_p2, %p243_p1 }
   0x9   :  { %p246_p4 = pnand %p245_p3, %p239_p0 }
   0xb   :  { %249 = shalt.err (!%p246_p4)
}
   0xc   :  { %s317_s15 = smov 128   ;;  %s318_s16 = smov 8  }
   0xd   :  { %32 = dma.hbm_to_vmem [thread:$0]  %s357_s1, 1664, %s27_s13, [#allocation6], %s317_s15, %s317_s15, %s318_s16  }
   0xe   :  { %s319_s19 = smov [#allocation2]   ;;  %s320_s21 = smov [#allocation7]  }
   0xf   :  { %s17_s20 = sshll.u32 %s319_s19, 4  ;;  %s39_s22 = sshll.u32 %s320_s21, 4  ;;  %s18_s20 = int_to_ptr.vmem [resolvable:$true] %s17_s20  ;;  %s40_s22 = int_to_ptr.vmem [resolvable:$true] %s39_s22 }
  0x10   :  { %s258_s23 = scalar_lea.vmem %s18_s20, 128  ;;  %p263_p6 = scmp.lt.s32.totalorder %s18_s20, %s18_s20 }
  0x11   :  { %p259_p5 = scmp.ne.s32.totalorder %s18_s20, %s258_s23  ;;  %p264_p7 = scmp.lt.s32.totalorder %s258_s23, %s258_s23 }
  0x13   :  { %p265_p8 = por %p264_p7, %p263_p6 }
  0x15   :  { %p266_p9 = pnand %p265_p8, %p259_p5 }
  0x17   :  { %269 = shalt.err (!%p266_p9)
}
  0x18   :  { %20 = dma.hbm_to_vmem [thread:$0]  %s356_s0, 128, %s18_s20, [#allocation3]  }
  0x19   :  { %s278_s26 = scalar_lea.vmem %s40_s22, 128  ;;  %p283_p11 = scmp.lt.s32.totalorder %s40_s22, %s40_s22 }
  0x1a   :  { %p279_p10 = scmp.ne.s32.totalorder %s40_s22, %s278_s26  ;;  %p284_p12 = scmp.lt.s32.totalorder %s278_s26, %s278_s26 }
  0x1c   :  { %p285_p13 = por %p284_p12, %p283_p11 }
  0x1e   :  { %p286_p0 = pnand %p285_p13, %p279_p10 }
  0x20   :  { %289 = shalt.err (!%p286_p0)
}
  0x21   :  { %42 = dma.hbm_to_vmem [thread:$0]  %s358_s2, 128, %s40_s22, [#allocation6]  }
  0x22   :  { %310 = dma.done.wait [#allocation3], 128  }
  0x23   :  { %311 = vsyncadd [#allocation3], 4294967168 }
  0x24   :  { %312 = dma.done.wait [#allocation6], 1792  }
  0x25   :  { %313 = vsyncadd [#allocation6], 4294965504  ;;  %v321_v0 = vmov 0.0   ;;  %vm322_vm0 = vmmov 0   ;;  %vm70_vm1 = vcmask 1043456   ;;  %v64_v2 = vld [vmem:[#allocation5 + $0x58] sm:$0xff] }
  0x26   :  { %191 = vmatprep.subr.mxu0 %v321_v0  ;;  %217 = vmatprep.mubr.msk.f32.mxu0 %vm322_vm0, %v321_v0  ;;  %v65_v1 = vld [vmem:[#allocation5 + $0x60] sm:$0xf]  ;;  %v63_v3 = vld [vmem:[#allocation5 + $0x50] sm:$0xff]  ;;  %v62_v4 = vld [vmem:[#allocation5 + $0x48] sm:$0xff]  ;;  %vm66_vm2 = vcmask 818176   ;;  %s323_s0 = smov [#allocation8]  }
  0x27   :  { %192 = vmatpush3.msk.msra.mxu0 %vm70_vm1, %v65_v1  ;;  %v61_v5 = vld [vmem:[#allocation5 + $0x40] sm:$0xff]  ;;  %v60_v6 = vld [vmem:[#allocation5 + $0x38] sm:$0xff]  ;;  %v59_v7 = vld [vmem:[#allocation5 + $0x30] sm:$0xff]  ;;  %s165_s2 = sshll.u32 %s323_s0, 4  ;;  %s166_s2 = int_to_ptr.vmem [resolvable:$true] %s165_s2 }
  0x28   :  { %193 = vmatprep.subr.mxu0 %v321_v0  ;;  %v58_v8 = vld [vmem:[#allocation5 + $0x28] sm:$0xff]  ;;  %v57_v9 = vld [vmem:[#allocation5 + $0x20] sm:$0xff]  ;;  %v56_v10 = vld [vmem:[#allocation5 + $0x18] sm:$0xff]  ;;  %s290_s29 = scalar_lea.vmem %s166_s2, 16  ;;  %s294_s30 = scalar_lea.vmem %s166_s2, 32 }
  0x29   :  { %194 = vmatpush3.msra.mxu0 %v64_v2  ;;  %v55_v11 = vld [vmem:[#allocation5 + $0x10] sm:$0xff]  ;;  %v54_v12 = vld [vmem:[#allocation5 + $0x8] sm:$0xff]  ;;  %v53_v13 = vld [vmem:[#allocation5] sm:$0xff]  ;;  %p291_p1 = scmp.ne.s32.totalorder %s166_s2, %s290_s29  ;;  %p295_p2 = scmp.lt.s32.totalorder %s166_s2, %s166_s2 }
  0x2a   :  { %195 = vmatprep.subr.mxu0 %v321_v0  ;;  %v52_v14 = vld [vmem:[#allocation2] sm:$0xff]  ;;  %v144_v15 = vld [vmem:[#allocation7] sm:$0xff]  ;;  %p296_p3 = scmp.lt.s32.totalorder %s294_s30, %s290_s29 }
  0x2b   :  { %196 = vmatpush3.msra.mxu0 %v63_v3 }
  0x2c   :  { %197 = vmatprep.subr.mxu0 %v321_v0  ;;  %p297_p4 = por %p296_p3, %p295_p2 }
  0x2d   :  { %198 = vmatpush3.msra.mxu0 %v62_v4 }
  0x2e   :  { %199 = vmatprep.subr.mxu0 %v321_v0  ;;  %p298_p5 = pnand %p297_p4, %p291_p1 }
  0x2f   :  { %200 = vmatpush3.msra.mxu0 %v61_v5 }
  0x30   :  { %201 = vmatprep.subr.mxu0 %v321_v0 }
  0x31   :  { %202 = vmatpush3.msra.mxu0 %v60_v6 }
  0x32   :  { %203 = vmatprep.subr.mxu0 %v321_v0 }
  0x33   :  { %204 = vmatpush3.msra.mxu0 %v59_v7 }
  0x34   :  { %205 = vmatprep.subr.mxu0 %v321_v0 }
  0x35   :  { %206 = vmatpush3.msra.mxu0 %v58_v8 }
  0x36   :  { %207 = vmatprep.subr.mxu0 %v321_v0 }
  0x37   :  { %208 = vmatpush3.msra.mxu0 %v57_v9 }
  0x38   :  { %209 = vmatprep.subr.mxu0 %v321_v0 }
  0x39   :  { %210 = vmatpush3.msra.mxu0 %v56_v10 }
  0x3a   :  { %211 = vmatprep.subr.mxu0 %v321_v0 }
  0x3b   :  { %212 = vmatpush3.msra.mxu0 %v55_v11 }
  0x3c   :  { %213 = vmatprep.subr.mxu0 %v321_v0 }
  0x3d   :  { %214 = vmatpush3.msra.mxu0 %v54_v12 }
  0x3e   :  { %215 = vmatprep.subr.mxu0 %v321_v0 }
  0x3f   :  { %216 = vmatpush3.msra.mxu0 %v53_v13 }
  0x40   :  { %218 = vmatmul.mubr.msk.f32.vlgmr.msra.gmra.mxu0 %vm66_vm2, %v52_v14 }
 0x100   :  { %v140_v16 = vpop.f32.mrf.mxu0 }
 0x101   :  { %v145_v17 = vsub.f32 %v140_v16, %v144_v15 }
 0x102   :  { %v219_v18 = vpop.f32.mrf.mxu0 }
 0x103   :  { %v146_v19 = vmul.f32 %v145_v17, %v145_v17 }
 0x105   :  { %v147_v20 = vsel %vm66_vm2, %v146_v19, 0.0 }
 0x106   :  { %148 = vadd.xlane.f32.xlu0 %v147_v20 }
 0x18f   :  { %v149_v21 = vpop.xlane.xlu0 %148 }
 0x190   :  { %v150_v22 = vrot.slane %v149_v21, 4 }
 0x192   :  { %v151_v23 = vadd.f32 %v150_v22, %v149_v21 }
 0x194   :  { %v152_v24 = vrot.slane %v151_v23, 2 }
 0x196   :  { %v153_v25 = vadd.f32 %v152_v24, %v151_v23 }
 0x198   :  { %v154_v26 = vrot.slane %v153_v25, 1 }
 0x19a   :  { %v155_v27 = vadd.f32 %v154_v26, %v153_v25 }
 0x19c   :  { %220 = vpush %v155_v27 }
 0x1cd   :  { %s221_s28 = spop %220 }
 0x1ce   :  { %v157_v28 = vstv %s221_s28 }
 0x1cf   :  { %158 = vst [vmem:[#allocation8] sm:$0x1] %v157_v28 }
 0x1d0   :  { %301 = shalt.err (!%p298_p5)
}
 0x1d1   :  { %168 = dma.vmem_to_hbm [thread:$0]  %s166_s2, 16, %s359_s3, [#allocation4]  }
 0x1d2   :  { %314 = dma.done.wait [#allocation4], 16  }
 0x1d3   :  { %315 = vsyncadd [#allocation4], 4294967280 }
 0x1d4   :  { %172 = vsyncpa [#allocation3], 1 }
 0x1d5   :  { %173 = vsyncpa [#allocation6], 1 }
 0x1d6   :  { %174 = vsyncpa [#allocation4], 1 }

// kernel: tpu_custom_call.1
= control target key start
LH: loop header
LB: loop body
LE: loop exit
PB: predicated region body
PF: predicated region fallthrough
CT: control target
= control target key end

     0   :  { %8 = vsyncpa [#allocation3], 0  ;;  %s356_s0 = inlined_call_operand.hbm [shape: f32[8,100], index: 0, kind: input, shape index: {}]   ;;  %s357_s1 = inlined_call_operand.hbm [shape: f32[100,100], index: 1, kind: input, shape index: {}]   ;;  %s358_s2 = inlined_call_operand.hbm [shape: f32[8,100], index: 2, kind: input, shape index: {}]   ;;  %s359_s3 = inlined_call_operand.hbm [shape: f32[1,1,128], index: 3, kind: output, shape index: {}]  }
   0x1   :  { %9 = vsyncpa [#allocation6], 0 }
   0x2   :  { %10 = vsyncpa [#allocation4], 0  ;;  %s316_s12 = smov [#allocation5]  }
   0x3   :  { %s26_s13 = sshll.u32 %s316_s12, 4  ;;  %s27_s13 = int_to_ptr.vmem [resolvable:$true] %s26_s13 }
   0x4   :  { %s238_s14 = scalar_lea.vmem %s27_s13, 1664  ;;  %p243_p1 = scmp.lt.s32.totalorder %s27_s13, %s27_s13 }
   0x5   :  { %p239_p0 = scmp.ne.s32.totalorder %s27_s13, %s238_s14  ;;  %p244_p2 = scmp.lt.s32.totalorder %s238_s14, %s238_s14 }
   0x7   :  { %p245_p3 = por %p244_p2, %p243_p1 }
   0x9   :  { %p246_p4 = pnand %p245_p3, %p239_p0 }
   0xb   :  { %249 = shalt.err (!%p246_p4)
}
   0xc   :  { %s317_s15 = smov 128   ;;  %s318_s16 = smov 8  }
   0xd   :  { %32 = dma.hbm_to_vmem [thread:$0]  %s357_s1, 1664, %s27_s13, [#allocation6], %s317_s15, %s317_s15, %s318_s16  }
   0xe   :  { %s319_s19 = smov [#allocation2]   ;;  %s320_s21 = smov [#allocation7]  }
   0xf   :  { %s17_s20 = sshll.u32 %s319_s19, 4  ;;  %s39_s22 = sshll.u32 %s320_s21, 4  ;;  %s18_s20 = int_to_ptr.vmem [resolvable:$true] %s17_s20  ;;  %s40_s22 = int_to_ptr.vmem [resolvable:$true] %s39_s22 }
  0x10   :  { %s258_s23 = scalar_lea.vmem %s18_s20, 128  ;;  %p263_p6 = scmp.lt.s32.totalorder %s18_s20, %s18_s20 }
  0x11   :  { %p259_p5 = scmp.ne.s32.totalorder %s18_s20, %s258_s23  ;;  %p264_p7 = scmp.lt.s32.totalorder %s258_s23, %s258_s23 }
  0x13   :  { %p265_p8 = por %p264_p7, %p263_p6 }
  0x15   :  { %p266_p9 = pnand %p265_p8, %p259_p5 }
  0x17   :  { %269 = shalt.err (!%p266_p9)
}
  0x18   :  { %20 = dma.hbm_to_vmem [thread:$0]  %s356_s0, 128, %s18_s20, [#allocation3]  }
  0x19   :  { %s278_s26 = scalar_lea.vmem %s40_s22, 128  ;;  %p283_p11 = scmp.lt.s32.totalorder %s40_s22, %s40_s22 }
  0x1a   :  { %p279_p10 = scmp.ne.s32.totalorder %s40_s22, %s278_s26  ;;  %p284_p12 = scmp.lt.s32.totalorder %s278_s26, %s278_s26 }
  0x1c   :  { %p285_p13 = por %p284_p12, %p283_p11 }
  0x1e   :  { %p286_p0 = pnand %p285_p13, %p279_p10 }
  0x20   :  { %289 = shalt.err (!%p286_p0)
}
  0x21   :  { %42 = dma.hbm_to_vmem [thread:$0]  %s358_s2, 128, %s40_s22, [#allocation6]  }
  0x22   :  { %310 = dma.done.wait [#allocation3], 128  }
  0x23   :  { %311 = vsyncadd [#allocation3], 4294967168 }
  0x24   :  { %312 = dma.done.wait [#allocation6], 1792  }
  0x25   :  { %313 = vsyncadd [#allocation6], 4294965504  ;;  %v321_v0 = vmov 0.0   ;;  %vm322_vm0 = vmmov 0   ;;  %vm70_vm1 = vcmask 1043456   ;;  %v64_v2 = vld [vmem:[#allocation5 + $0x58] sm:$0xff] }
  0x26   :  { %191 = vmatprep.subr.mxu0 %v321_v0  ;;  %217 = vmatprep.mubr.msk.f32.mxu0 %vm322_vm0, %v321_v0  ;;  %v65_v1 = vld [vmem:[#allocation5 + $0x60] sm:$0xf]  ;;  %v63_v3 = vld [vmem:[#allocation5 + $0x50] sm:$0xff]  ;;  %v62_v4 = vld [vmem:[#allocation5 + $0x48] sm:$0xff]  ;;  %vm66_vm2 = vcmask 818176   ;;  %s323_s0 = smov [#allocation8]  }
  0x27   :  { %192 = vmatpush3.msk.msra.mxu0 %vm70_vm1, %v65_v1  ;;  %v61_v5 = vld [vmem:[#allocation5 + $0x40] sm:$0xff]  ;;  %v60_v6 = vld [vmem:[#allocation5 + $0x38] sm:$0xff]  ;;  %v59_v7 = vld [vmem:[#allocation5 + $0x30] sm:$0xff]  ;;  %s165_s2 = sshll.u32 %s323_s0, 4  ;;  %s166_s2 = int_to_ptr.vmem [resolvable:$true] %s165_s2 }
  0x28   :  { %193 = vmatprep.subr.mxu0 %v321_v0  ;;  %v58_v8 = vld [vmem:[#allocation5 + $0x28] sm:$0xff]  ;;  %v57_v9 = vld [vmem:[#allocation5 + $0x20] sm:$0xff]  ;;  %v56_v10 = vld [vmem:[#allocation5 + $0x18] sm:$0xff]  ;;  %s290_s29 = scalar_lea.vmem %s166_s2, 16  ;;  %s294_s30 = scalar_lea.vmem %s166_s2, 32 }
  0x29   :  { %194 = vmatpush3.msra.mxu0 %v64_v2  ;;  %v55_v11 = vld [vmem:[#allocation5 + $0x10] sm:$0xff]  ;;  %v54_v12 = vld [vmem:[#allocation5 + $0x8] sm:$0xff]  ;;  %v53_v13 = vld [vmem:[#allocation5] sm:$0xff]  ;;  %p291_p1 = scmp.ne.s32.totalorder %s166_s2, %s290_s29  ;;  %p295_p2 = scmp.lt.s32.totalorder %s166_s2, %s166_s2 }
  0x2a   :  { %195 = vmatprep.subr.mxu0 %v321_v0  ;;  %v52_v14 = vld [vmem:[#allocation2] sm:$0xff]  ;;  %v144_v15 = vld [vmem:[#allocation7] sm:$0xff]  ;;  %p296_p3 = scmp.lt.s32.totalorder %s294_s30, %s290_s29 }
  0x2b   :  { %196 = vmatpush3.msra.mxu0 %v63_v3 }
  0x2c   :  { %197 = vmatprep.subr.mxu0 %v321_v0  ;;  %p297_p4 = por %p296_p3, %p295_p2 }
  0x2d   :  { %198 = vmatpush3.msra.mxu0 %v62_v4 }
  0x2e   :  { %199 = vmatprep.subr.mxu0 %v321_v0  ;;  %p298_p5 = pnand %p297_p4, %p291_p1 }
  0x2f   :  { %200 = vmatpush3.msra.mxu0 %v61_v5 }
  0x30   :  { %201 = vmatprep.subr.mxu0 %v321_v0 }
  0x31   :  { %202 = vmatpush3.msra.mxu0 %v60_v6 }
  0x32   :  { %203 = vmatprep.subr.mxu0 %v321_v0 }
  0x33   :  { %204 = vmatpush3.msra.mxu0 %v59_v7 }
  0x34   :  { %205 = vmatprep.subr.mxu0 %v321_v0 }
  0x35   :  { %206 = vmatpush3.msra.mxu0 %v58_v8 }
  0x36   :  { %207 = vmatprep.subr.mxu0 %v321_v0 }
  0x37   :  { %208 = vmatpush3.msra.mxu0 %v57_v9 }
  0x38   :  { %209 = vmatprep.subr.mxu0 %v321_v0 }
  0x39   :  { %210 = vmatpush3.msra.mxu0 %v56_v10 }
  0x3a   :  { %211 = vmatprep.subr.mxu0 %v321_v0 }
  0x3b   :  { %212 = vmatpush3.msra.mxu0 %v55_v11 }
  0x3c   :  { %213 = vmatprep.subr.mxu0 %v321_v0 }
  0x3d   :  { %214 = vmatpush3.msra.mxu0 %v54_v12 }
  0x3e   :  { %215 = vmatprep.subr.mxu0 %v321_v0 }
  0x3f   :  { %216 = vmatpush3.msra.mxu0 %v53_v13 }
  0x40   :  { %218 = vmatmul.mubr.msk.f32.vlgmr.msra.gmra.mxu0 %vm66_vm2, %v52_v14 }
 0x100   :  { %v140_v16 = vpop.f32.mrf.mxu0 }
 0x101   :  { %v145_v17 = vsub.f32 %v140_v16, %v144_v15 }
 0x102   :  { %v219_v18 = vpop.f32.mrf.mxu0 }
 0x103   :  { %v146_v19 = vmul.f32 %v145_v17, %v145_v17 }
 0x105   :  { %v147_v20 = vsel %vm66_vm2, %v146_v19, 0.0 }
 0x106   :  { %148 = vadd.xlane.f32.xlu0 %v147_v20 }
 0x18f   :  { %v149_v21 = vpop.xlane.xlu0 %148 }
 0x190   :  { %v150_v22 = vrot.slane %v149_v21, 4 }
 0x192   :  { %v151_v23 = vadd.f32 %v150_v22, %v149_v21 }
 0x194   :  { %v152_v24 = vrot.slane %v151_v23, 2 }
 0x196   :  { %v153_v25 = vadd.f32 %v152_v24, %v151_v23 }
 0x198   :  { %v154_v26 = vrot.slane %v153_v25, 1 }
 0x19a   :  { %v155_v27 = vadd.f32 %v154_v26, %v153_v25 }
 0x19c   :  { %220 = vpush %v155_v27 }
 0x1cd   :  { %s221_s28 = spop %220 }
 0x1ce   :  { %v157_v28 = vstv %s221_s28 }
 0x1cf   :  { %158 = vst [vmem:[#allocation8] sm:$0x1] %v157_v28 }
 0x1d0   :  { %301 = shalt.err (!%p298_p5)
}
 0x1d1   :  { %168 = dma.vmem_to_hbm [thread:$0]  %s166_s2, 16, %s359_s3, [#allocation4]  }
 0x1d2   :  { %314 = dma.done.wait [#allocation4], 16  }
 0x1d3   :  { %315 = vsyncadd [#allocation4], 4294967280 }
 0x1d4   :  { %172 = vsyncpa [#allocation3], 1 }
 0x1d5   :  { %173 = vsyncpa [#allocation6], 1 }
 0x1d6   :  { %174 = vsyncpa [#allocation4], 1 }

</bundles_post_ra>
